<compile_context>
chip_gen: v7x
topology: tpu7x:2x2x1
jax: 0.10.0
libtpu: 0.0.40
codegen_flags: <defaults>
</compile_context>

<pallas_src>
import functools

import jax
import jax.numpy as jnp
from jax import lax
from jax.experimental import pallas as pl
from jax.experimental.pallas import tpu as pltpu

EPS = 1e-5  # nn.InstanceNorm2d default eps (affine=False, biased variance)


# ---------------------------------------------------------------------------
# Kernel
# ---------------------------------------------------------------------------
def _make_adain_kernel(true_spatial):
    inv_p = 1.0 / float(true_spatial)

    def kernel(x_ref, s_ref, b_ref, o_ref):
        y = x_ref[0]                                   # (C_tile, P_pad) f32
        # One-pass statistics (padding lanes are zero, so the sums over the
        # padded lane extent equal the sums over the true spatial extent).
        s1 = jnp.sum(y, axis=1, keepdims=True)         # (C_tile, 1)
        s2 = jnp.sum(y * y, axis=1, keepdims=True)     # (C_tile, 1)
        mean = s1 * inv_p
        var = s2 * inv_p - mean * mean
        inv_std = lax.rsqrt(var + EPS)                 # (C_tile, 1)
        # Fold InstanceNorm + AdaIN affine into one per-channel FMA.
        a = inv_std * s_ref[...]                       # (C_tile, 1)
        c = b_ref[...] - mean * a                      # (C_tile, 1)
        o_ref[0] = y * a + c

    return kernel


# ---------------------------------------------------------------------------
# Wrapper
# ---------------------------------------------------------------------------
def _pick_channel_tile(C, max_tile=256):
    """Largest divisor of C that is a multiple of 8 and <= max_tile, else C."""
    if C <= max_tile:
        return C
    for t in range(max_tile, 7, -1):
        if C % t == 0 and t % 8 == 0:
            return t
    return C


@functools.partial(jax.jit, static_argnames=())
def adain(x, scale, bias):
    """x: (N, C, H, W) f32; scale, bias: (C,)-broadcastable f32."""
    N, C, H, W = x.shape
    P = H * W
    P_pad = ((P + 127) // 128) * 128                   # lane-dense stores

    x2 = x.reshape(N, C, P).astype(jnp.float32)
    if P_pad != P:
        x2 = jnp.pad(x2, ((0, 0), (0, 0), (0, P_pad - P)))

    s = scale.reshape(C, 1).astype(jnp.float32)
    b = bias.reshape(C, 1).astype(jnp.float32)

    TC = _pick_channel_tile(C)
    grid = (N, C // TC)

    cost = pl.CostEstimate(
        flops=6 * N * C * P,
        transcendentals=N * C,
        bytes_accessed=int(2 * N * C * P_pad * 4 + 2 * C * 4),
    )

    out = pl.pallas_call(
        _make_adain_kernel(P),
        out_shape=jax.ShapeDtypeStruct((N, C, P_pad), jnp.float32),
        grid=grid,
        in_specs=[
            pl.BlockSpec((1, TC, P_pad), lambda n, c: (n, c, 0)),
            pl.BlockSpec((TC, 1), lambda n, c: (c, 0)),
            pl.BlockSpec((TC, 1), lambda n, c: (c, 0)),
        ],
        out_specs=pl.BlockSpec((1, TC, P_pad), lambda n, c: (n, c, 0)),
        compiler_params=pltpu.CompilerParams(
            dimension_semantics=("parallel", "parallel"),
            vmem_limit_bytes=64 << 20,
        ),
        cost_estimate=cost,
    )(x2, s, b)

    if P_pad != P:
        out = out[:, :, :P]
    return out.reshape(N, C, H, W)


# ---------------------------------------------------------------------------
# Pure-JAX reference (independent two-pass formulation) for a sanity check
# ---------------------------------------------------------------------------
def ref_adain(x, scale, bias):
    m = jnp.mean(x, axis=(2, 3), keepdims=True)
    var = jnp.mean(jnp.square(x - m), axis=(2, 3), keepdims=True)
    y = (x - m) * lax.rsqrt(var + EPS)
    C = x.shape[1]
    return y * scale.reshape(1, C, 1, 1) + bias.reshape(1, C, 1, 1)


if __name__ == "__main__":
    key = jax.random.PRNGKey(0)
    kx, ks, kb = jax.random.split(key, 3)

    N, C, H, W = 2, 8, 16, 16
    x = jax.random.normal(kx, (N, C, H, W), jnp.float32)
    scale = jax.random.normal(ks, (C,), jnp.float32)
    bias = jax.random.normal(kb, (C,), jnp.float32)

    out = jax.block_until_ready(adain(x, scale, bias))
    ref = ref_adain(x, scale, bias)
    err = float(jnp.max(jnp.abs(out - ref)))

    if out.shape == x.shape and err < 1e-4:
        print("KERNEL_OK")
    else:
        raise SystemExit(f"mismatch: shape={out.shape}, max_abs_err={err}")
</pallas_src>

<mosaic_0001>
module attributes {stable_mosaic.version = 11 : i64} {
  func.func @kernel(%arg0: i32, %arg1: i32, %arg2: memref<1x8x256xf32, #tpu.memory_space<vmem>>, %arg3: memref<8x1xf32, #tpu.memory_space<vmem>>, %arg4: memref<8x1xf32, #tpu.memory_space<vmem>>, %arg5: memref<1x8x256xf32, #tpu.memory_space<vmem>>) attributes {dimension_semantics = [#tpu.dimension_semantics<parallel>, #tpu.dimension_semantics<parallel>], iteration_bounds = array<i64: 2, 1>, scalar_prefetch = 0 : i64, scratch_operands = 0 : i64, tpu.core_type = #tpu.core_type<tc>, window_params = [{transform_indices = @transform_0, window_bounds = array<i64: 1, 8, 256>}, {transform_indices = @transform_1, window_bounds = array<i64: 8, 1>}, {transform_indices = @transform_2, window_bounds = array<i64: 8, 1>}, {transform_indices = @transform_3, window_bounds = array<i64: 1, 8, 256>}]} {
    %c0 = arith.constant 0 : index
    %c0_0 = arith.constant 0 : index
    %c0_1 = arith.constant 0 : index
    %0 = vector.load %arg2[%c0, %c0_0, %c0_1] : memref<1x8x256xf32, #tpu.memory_space<vmem>>, vector<1x8x256xf32>
    %1 = vector.shape_cast %0 : vector<1x8x256xf32> to vector<8x256xf32>
    %cst = arith.constant dense<0.000000e+00> : vector<8xf32>
    %2 = vector.multi_reduction <add>, %1, %cst [1] : vector<8x256xf32> to vector<8xf32>
    %3 = vector.shape_cast %2 : vector<8xf32> to vector<8x1xf32>
    %4 = arith.mulf %1, %1 : vector<8x256xf32>
    %cst_2 = arith.constant dense<0.000000e+00> : vector<8xf32>
    %5 = vector.multi_reduction <add>, %4, %cst_2 [1] : vector<8x256xf32> to vector<8xf32>
    %6 = vector.shape_cast %5 : vector<8xf32> to vector<8x1xf32>
    %cst_3 = arith.constant 3.906250e-03 : f32
    %7 = vector.broadcast %cst_3 : f32 to vector<8x1xf32>
    %8 = arith.mulf %3, %7 : vector<8x1xf32>
    %cst_4 = arith.constant 3.906250e-03 : f32
    %9 = vector.broadcast %cst_4 : f32 to vector<8x1xf32>
    %10 = arith.mulf %6, %9 : vector<8x1xf32>
    %11 = arith.mulf %8, %8 : vector<8x1xf32>
    %12 = arith.subf %10, %11 : vector<8x1xf32>
    %cst_5 = arith.constant 9.99999974E-6 : f32
    %13 = vector.broadcast %cst_5 : f32 to vector<8x1xf32>
    %14 = arith.addf %12, %13 : vector<8x1xf32>
    %15 = math.rsqrt %14 : vector<8x1xf32>
    %c0_6 = arith.constant 0 : index
    %c0_7 = arith.constant 0 : index
    %16 = vector.load %arg3[%c0_6, %c0_7] : memref<8x1xf32, #tpu.memory_space<vmem>>, vector<8x1xf32>
    %17 = arith.mulf %15, %16 : vector<8x1xf32>
    %c0_8 = arith.constant 0 : index
    %c0_9 = arith.constant 0 : index
    %18 = vector.load %arg4[%c0_8, %c0_9] : memref<8x1xf32, #tpu.memory_space<vmem>>, vector<8x1xf32>
    %19 = arith.mulf %8, %17 : vector<8x1xf32>
    %20 = arith.subf %18, %19 : vector<8x1xf32>
    %21 = vector.broadcast %17 : vector<8x1xf32> to vector<8x256xf32>
    %22 = arith.mulf %1, %21 : vector<8x256xf32>
    %23 = vector.broadcast %20 : vector<8x1xf32> to vector<8x256xf32>
    %24 = arith.addf %22, %23 : vector<8x256xf32>
    %c0_10 = arith.constant 0 : index
    %c0_11 = arith.constant 0 : index
    %c0_12 = arith.constant 0 : index
    %25 = vector.load %arg5[%c0_10, %c0_11, %c0_12] : memref<1x8x256xf32, #tpu.memory_space<vmem>>, vector<1x8x256xf32>
    %26 = vector.shape_cast %25 : vector<1x8x256xf32> to vector<8x256xf32>
    %27 = vector.shape_cast %24 : vector<8x256xf32> to vector<1x8x256xf32>
    tpu.vector_store %arg5[%c0_10, %c0_11, %c0_12], %27 {strides = array<i32>} : memref<1x8x256xf32, #tpu.memory_space<vmem>>, vector<1x8x256xf32>,
    return
  }
  func.func @transform_0(%arg0: i32, %arg1: i32) -> (i32, i32, i32) {
    %c0_i32 = arith.constant 0 : i32
    %c0_i32_0 = arith.constant 0 : i32
    return %arg0, %arg1, %c0_i32 : i32, i32, i32
  }
  func.func @transform_1(%arg0: i32, %arg1: i32) -> (i32, i32) {
    %c0_i32 = arith.constant 0 : i32
    %c0_i32_0 = arith.constant 0 : i32
    return %arg1, %c0_i32 : i32, i32
  }
  func.func @transform_2(%arg0: i32, %arg1: i32) -> (i32, i32) {
    %c0_i32 = arith.constant 0 : i32
    %c0_i32_0 = arith.constant 0 : i32
    return %arg1, %c0_i32 : i32, i32
  }
  func.func @transform_3(%arg0: i32, %arg1: i32) -> (i32, i32, i32) {
    %c0_i32 = arith.constant 0 : i32
    %c0_i32_0 = arith.constant 0 : i32
    return %arg0, %arg1, %c0_i32 : i32, i32, i32
  }
}

</mosaic_0001>

<bundles_post_ra>
// kernel: adain.1
= control target key start
LH: loop header
LB: loop body
LE: loop exit
PB: predicated region body
PF: predicated region fallthrough
CT: control target
= control target key end

     0   :  { %8 = vsyncpa [#allocation3], 0  ;;  %s960_s0 = inlined_call_operand.hbm [shape: f32[2,8,256], index: 0, kind: input, shape index: {}]   ;;  %s961_s1 = inlined_call_operand.hbm [shape: f32[8,1], index: 1, kind: input, shape index: {}]   ;;  %s962_s2 = inlined_call_operand.hbm [shape: f32[8,1], index: 2, kind: input, shape index: {}]   ;;  %s963_s3 = inlined_call_operand.hbm [shape: f32[2,8,256], index: 3, kind: output, shape index: {}]  }
   0x1   :  { %10 = vsyncpa [#allocation3 + $0x1], 0 }
   0x2   :  { %11 = vsyncpa [#allocation6], 0 }
   0x3   :  { %12 = vsyncpa [#allocation4], 0 }
   0x4   :  { %14 = vsyncpa [#allocation4 + $0x1], 0  ;;  %s713_s12 = smov 0   ;;  %s715_s13 = smov 0  }
   0x5   :  { %s717_s14 = smov 0   ;;  %s719_s15 = smov 0  }
   0x6   :  { %s721_s16 = smov 0   ;;  %s723_s17 = smov 0  }
   0x7 LB: > { %s405_s18 = sadd.s32 4294967295, %s686_s17   ;;  %s406_s19 = sadd.s32 4294967294, %s686_s17   ;;  %s686_s17 = sphi %s723_s17, %s20_s17   ;;  %s682_s16 = sphi %s721_s16, %s986_s16   ;;  %s678_s15 = sphi %s719_s15, %s985_s15   ;;  %s674_s14 = sphi %s717_s14, %s984_s14   ;;  %s670_s13 = sphi %s715_s13, %s983_s13   ;;  %s666_s12 = sphi %s713_s12, %s982_s12  }
   0x8   : > { %p54_p0 = scmp.ne.s32.totalorder %s670_s13, %s666_s12  ;;  %p747_p1 = scmp.eq.s32.totalorder %s405_s18, 0 }
   0x9   : > { %p751_p2 = scmp.eq.s32.totalorder %s405_s18, 1  ;;  %p138_p3 = scmp.eq.s32.totalorder %s406_s19, 1 }
   0xa   : > { %s968_s20 = scalar_select %p747_p1, 1, 0 }
   0xb   : > { %s969_s21 = scalar_select %p751_p2, 1, 0 }
   0xc   : > { %p757_p4 = por %p747_p1, %p54_p0  ;;  %p407_p5 = scmp.ge.s32.totalorder %s686_s17, 1 }
   0xd   : > { %p762_p6 = por %p138_p3, %p54_p0  ;;  %p145_p7 = scmp.lt.s32.totalorder %s686_s17, 3 }
   0xe   : > { %s970_s22 = scalar_select %p757_p4, 1, 0 }
   0xf   : > { %s971_s23 = scalar_select %p762_p6, 1, 0 }
  0x10   : > { %p767_p8 = pnand %p407_p5, %p145_p7  ;;  %s688_s25 = smov [#allocation5]  }
  0x11   : > { %s160_s26 = sshll.u32 %s688_s25, 4  ;;  %s689_s27 = smov [#allocation7]   ;;  %s161_s26 = int_to_ptr.vmem [resolvable:$true] %s160_s26 }
  0x12   : > { %s972_s24 = scalar_select %p767_p8, 1, 0 }
  0x13   : > { %p438_p10 = pneg %p767_p8  ;;  %s173_s28 = sshll.u32 %s689_s27, 4  ;;  %s780_s28 = int_to_ptr.vmem [resolvable:$true] %s173_s28 }
  0x14   : > { %s514_s5 = scalar_lea.hbm %s961_s1, 128 }
  0x15   : > { %p776_p11 = pnand %p438_p10, %p747_p1  ;;  %p515_p12 = scmp.ne.s32.totalorder %s961_s1, %s514_s5 }
  0x16   : > { %p521_p5 = scmp.lt.u32.totalorder %s514_s5, %s961_s1 }
  0x17   : > { %p516_p13 = pneg %p776_p11 }
  0x19   : > { %p517_p0 = pnand %p516_p13, %p515_p12 }
  0x1b   : > { %p518_p3 = pneg %p517_p0 }
  0x1d   : > { %p523_p7 = pnand %p521_p5, %p518_p3 }
  0x1f   : > { %526 = shalt.err (!%p523_p7)
}
  0x20   : > { %s527_s10 = scalar_lea.vmem %s161_s26, 128  ;;  %p535_p1 = scmp.lt.s32.totalorder %s161_s26, %s161_s26 }
  0x21   : > { %p528_p10 = scmp.ne.s32.totalorder %s161_s26, %s527_s10  ;;  %p536_p4 = scmp.lt.s32.totalorder %s527_s10, %s527_s10 }
  0x23   : > { %p530_p9 = pnand %p528_p10, %p516_p13  ;;  %p537_p8 = por %p536_p4, %p535_p1 }
  0x25   : > { %p531_p6 = pneg %p530_p9 }
  0x27   : > { %p538_p2 = pnand %p537_p8, %p531_p6 }
  0x29   : > { %541 = shalt.err (!%p538_p2)
}
  0x2a   : > { %441 = dma.hbm_to_vmem [thread:$0]  (!%p776_p11), %s961_s1, 128, %s161_s26, [#allocation6]  }
  0x2b   : > { %s542_s27 = scalar_lea.hbm %s962_s2, 128 }
  0x2c   : > { %p543_p9 = scmp.ne.s32.totalorder %s962_s2, %s542_s27  ;;  %p549_p2 = scmp.lt.u32.totalorder %s542_s27, %s962_s2 }
  0x2e   : > { %p545_p1 = pnand %p543_p9, %p516_p13 }
  0x30   : > { %p546_p4 = pneg %p545_p1 }
  0x32   : > { %p551_p6 = pnand %p549_p2, %p546_p4 }
  0x34   : > { %554 = shalt.err (!%p551_p6)
}
  0x35   : > { %s555_s26 = scalar_lea.vmem %s780_s28, 128  ;;  %p563_p3 = scmp.lt.s32.totalorder %s780_s28, %s780_s28 }
  0x36   : > { %p556_p8 = scmp.ne.s32.totalorder %s780_s28, %s555_s26  ;;  %p564_p5 = scmp.lt.s32.totalorder %s555_s26, %s555_s26 }
  0x38   : > { %p558_p12 = pnand %p556_p8, %p516_p13  ;;  %p565_p7 = por %p564_p5, %p563_p3 }
  0x3a   : > { %p559_p0 = pneg %p558_p12 }
  0x3c   : > { %p566_p10 = pnand %p565_p7, %p559_p0 }
  0x3e   : > { %569 = shalt.err (!%p566_p10)
}
  0x3f   : > { %444 = dma.hbm_to_vmem [thread:$0]  (!%p776_p11), %s962_s2, 128, %s780_s28, [#allocation6]  }
  0x40   : > { %s32_s9 = sadd.s32 1, %s682_s16  ;;  %s41_s10 = sadd.s32 1, %s674_s14 }
  0x41   : > { %p34_p13 = scmp.ge.s32.totalorder %s32_s9, 2  ;;  %p48_p9 = scmp.ne.s32.totalorder %s674_s14, %s670_s13 }
  0x42   : > { %p49_p1 = scmp.eq.s32.totalorder %s686_s17, 0  ;;  %p455_p4 = scmp.lt.s32.totalorder %s686_s17, 2 }
  0x43   : > { %s988_s9 = smov (%p34_p13, %s32_s9), 0  ;;  %p974_p6 = scmp.ne.s32.totalorder %s969_s21, 0 }
  0x44   : > { %p50_p2 = por %p49_p1, %p48_p9  ;;  %s36_s11 = ssub.s32 %s682_s16, %s988_s9 }
  0x45   : > { %p839_p8 = por %p974_p6, %p48_p9  ;;  %s184_s18 = sand.u32 1, %s674_s14  }
  0x46   : > { %p39_p12 = scmp.eq.s32.totalorder %s36_s11, 0  ;;  %s411_s28 = sshll.u32 %s184_s18, 4 }
  0x47   : > { %s424_s19 = sshll.u32 %s682_s16, 8  ;;  %s188_s21 = scalar_lea.vmem [#allocation2], %s411_s28 }
  0x48   : > { %s848_s25 = scalar_select %p39_p12, %s674_s14, %s41_s10  }
  0x49   : > { %s853_s4 = scalar_lea.hbm %s960_s0, %s424_s19  ;;  %s198_s5 = sshll.u32 %s188_s21, 4  ;;  %s861_s5 = int_to_ptr.vmem [resolvable:$true] %s198_s5 }
  0x4a   : > { %p857_p11 = pnand %p455_p4, %p50_p2  ;;  %s185_s26 = scalar_lea.sflag [#allocation3], %s184_s18 }
  0x4b   : > { %s570_s7 = scalar_lea.hbm %s853_s4, 256  ;;  %s575_s11 = scalar_lea.hbm %s960_s0, 512 }
  0x4c   : > { %p571_p0 = scmp.ne.s32.totalorder %s853_s4, %s570_s7  ;;  %p572_p3 = pneg %p857_p11 }
  0x4d   : > { %p576_p10 = scmp.lt.u32.totalorder %s853_s4, %s960_s0  ;;  %p577_p13 = scmp.lt.u32.totalorder %s575_s11, %s570_s7 }
  0x4e   : > { %p573_p5 = pnand %p572_p3, %p571_p0  ;;  %p579_p1 = scmp.lt.u32.totalorder %s570_s7, %s853_s4 }
  0x4f   : > { %p578_p9 = por %p577_p13, %p576_p10 }
  0x50   : > { %p574_p7 = pneg %p573_p5 }
  0x51   : > { %p580_p4 = por %p579_p1, %p578_p9 }
  0x53   : > { %p581_p2 = pnand %p580_p4, %p574_p7 }
  0x55   : > { %584 = shalt.err (!%p581_p2)
}
  0x56   : > { %s585_s18 = scalar_lea.vmem %s861_s5, 256  ;;  %s690_s27 = smov [#allocation2]  }
  0x57   : > { %p586_p6 = scmp.ne.s32.totalorder %s861_s5, %s585_s18  ;;  %s590_s30 = sshll.u32 %s690_s27, 4  ;;  %s591_s30 = int_to_ptr.vmem [resolvable:$false] %s590_s30 }
  0x58   : > { %s592_s21 = scalar_lea.vmem %s591_s30, 512  ;;  %p593_p5 = scmp.lt.s32.totalorder %s861_s5, %s591_s30 }
  0x59   : > { %p588_p12 = pnand %p586_p6, %p572_p3  ;;  %p594_p10 = scmp.lt.s32.totalorder %s592_s21, %s585_s18 }
  0x5b   : > { %p589_p0 = pneg %p588_p12  ;;  %p595_p13 = por %p594_p10, %p593_p5 }
  0x5d   : > { %p596_p9 = pnand %p595_p13, %p589_p0 }
  0x5f   : > { %599 = shalt.err (!%p596_p9)
}
  0x60   : > { %448 = dma.hbm_to_vmem [thread:$0]  (!%p857_p11), %s853_s4, 256, %s861_s5, %s185_s26  }
  0x61   : > { %p977_p7 = scmp.ne.s32.totalorder %s972_s24, 0 }
  0x62   : > { %s891_s7 = sand.u32 (!%p977_p7), 1, %s670_s13   ;;  %p978_p3 = scmp.ne.s32.totalorder (!%p977_p7), %s970_s22, 0 }
  0x63   : > { %207 = sbr.rel (%p977_p7) target bundleno = 426 (0x1aa), region = 32  ;;  %s415_s8 = sshll.u32 (!%p977_p7), %s891_s7, 4 }
  0x64   : > { %s210_s10 = scalar_lea.sflag (!%p977_p7), [#allocation3], %s891_s7  ;;  %s213_s11 = scalar_lea.vmem (!%p977_p7), [#allocation2], %s415_s8 }
  0x6a   : > { %653 = dma.done.wait (%p978_p3), %s210_s10, 256  }
  0x6b   : > { %655 = vsyncadd (%p978_p3), %s210_s10, 4294967040  ;;  %p979_p11 = scmp.ne.s32.totalorder %s968_s20, 0 }
  0x6d   : > { %657 = dma.done.wait (%p979_p11), [#allocation6], 256  }
  0x6e   : > { %659 = vsyncadd (%p979_p11), [#allocation6], 4294967040  ;;  %v244_v0 = vld [vmem:[%s213_s11] sm:$0xff]  ;;  %v245_v1 = vld [vmem:[%s213_s11 + $0x8] sm:$0xff]  ;;  %v691_v6 = vmov 0   ;;  %s425_s20 = sshll.u32 %s678_s15, 8 }
  0x6f   : > { %v246_v2 = vadd.f32 %v245_v1, %v244_v0  ;;  %v249_v3 = vmul.f32 %v244_v0, %v244_v0  ;;  %v250_v4 = vmul.f32 %v245_v1, %v245_v1  ;;  %510 = vset.pattern.permute.xlu1 %v691_v6  ;;  %511 = vset.pattern.permute.xlu0 %v691_v6  ;;  %v260_v14 = vld [vmem:[#allocation5] sm:$0xff]  ;;  %v262_v17 = vld [vmem:[#allocation7] sm:$0xff]  ;;  %s243_s22 = scalar_lea.vmem [#allocation8], %s415_s8  ;;  %s911_s6 = scalar_lea.hbm %s963_s3, %s425_s20 }
  0x70   : > { %s298_s24 = sshll.u32 %s243_s22, 4  ;;  %s282_s15 = scalar_lea.sflag [#allocation4], %s891_s7  ;;  %s913_s24 = int_to_ptr.vmem [resolvable:$true] %s298_s24 }
  0x71   : > { %247 = vadd.xlane.f32.xlu0 %v246_v2  ;;  %v251_v5 = vadd.f32 %v250_v4, %v249_v3  ;;  %s600_s26 = scalar_lea.vmem %s913_s24, 256  ;;  %s692_s28 = smov [#allocation8]  }
  0x72   : > { %p601_p1 = scmp.ne.s32.totalorder %s913_s24, %s600_s26  ;;  %s604_s19 = sshll.u32 %s692_s28, 4  ;;  %s605_s19 = int_to_ptr.vmem [resolvable:$false] %s604_s19 }
  0x73   : > { %s606_s18 = scalar_lea.vmem %s605_s19, 512  ;;  %p607_p6 = scmp.lt.s32.totalorder %s913_s24, %s605_s19 }
  0x74   : > { %p602_p4 = pnand %p601_p1, %p839_p8  ;;  %p608_p12 = scmp.lt.s32.totalorder %s606_s18, %s600_s26 }
  0x75   : > { %252 = vadd.xlane.f32.xlu0 %v251_v5 }
  0x76   : > { %p603_p2 = pneg %p602_p4  ;;  %p609_p0 = por %p608_p12, %p607_p6 }
  0x78   : > { %p610_p5 = pnand %p609_p0, %p603_p2 }
  0xfe   : > { %v248_v7 = vpop.xlane.xlu0 %247 }
  0xff   : > { %v254_v8 = vmul.f32 0.00390625, %v248_v7 }
 0x101   : > { %v256_v10 = vmul.f32 %v254_v8, %v254_v8 }
 0x102   : > { %v253_v9 = vpop.xlane.xlu0 %252 }
 0x103   : > { %v255_v11 = vmul.f32 0.00390625, %v253_v9 }
 0x105   : > { %v257_v12 = vsub.f32 %v255_v11, %v256_v10 }
 0x107   : > { %v258_v13 = vadd.f32 1e-05, %v257_v12 }
 0x109   : > { %512 = vrsqrt.f32 %v258_v13 }
 0x113   : > { %v513_v15 = vpop.eup %512 }
 0x114   : > { %v261_v16 = vmul.f32 %v513_v15, %v260_v14 }
 0x116   : > { %267 = vperm.xlu1 %510, %v261_v16   ;;  %v263_v18 = vmul.f32 %v261_v16, %v254_v8 }
 0x118   : > { %v264_v19 = vsub.f32 %v262_v17, %v263_v18 }
 0x11a   : > { %274 = vperm.xlu1 %510, %v264_v19  }
 0x195   : > { %v268_v20 = vpop.permute.xlu1 %267 }
 0x196   : > { %v270_v21 = vmul.f32 %v268_v20, %v244_v0  ;;  %v271_v22 = vmul.f32 %v268_v20, %v245_v1 }
 0x199   : > { %v275_v23 = vpop.permute.xlu1 %274 }
 0x19a   : > { %v277_v24 = vadd.f32 %v275_v23, %v270_v21  ;;  %v278_v25 = vadd.f32 %v275_v23, %v271_v22 }
 0x19c   : > { %279 = vst [vmem:[%s243_s22] sm:$0xff] %v277_v24  ;;  %280 = vst [vmem:[%s243_s22 + $0x8] sm:$0xff] %v278_v25 }
 0x19d   : > { %613 = shalt.err (!%p610_p5)
}
 0x19e   : > { %s614_s27 = scalar_lea.hbm %s911_s6, 256  ;;  %s618_s7 = scalar_lea.hbm %s963_s3, 512 }
 0x19f   : > { %p615_p10 = scmp.ne.s32.totalorder %s911_s6, %s614_s27  ;;  %p619_p7 = scmp.lt.u32.totalorder %s911_s6, %s963_s3 }
 0x1a0   : > { %p620_p3 = scmp.lt.u32.totalorder %s618_s7, %s614_s27  ;;  %p622_p1 = scmp.lt.u32.totalorder %s614_s27, %s911_s6 }
 0x1a1   : > { %p616_p13 = pnand %p615_p10, %p839_p8 }
 0x1a2   : > { %p621_p11 = por %p620_p3, %p619_p7 }
 0x1a3   : > { %p617_p9 = pneg %p616_p13 }
 0x1a4   : > { %p623_p4 = por %p622_p1, %p621_p11 }
 0x1a6   : > { %p624_p2 = pnand %p623_p4, %p617_p9 }
 0x1a8   : > { %627 = shalt.err (!%p624_p2)
}
 0x1a9   : > { %436 = dma.vmem_to_hbm [thread:$0]  (%p839_p8), %s913_s24, 256, %s911_s6, %s282_s15  }
 0x1aa PF: > { %s310_s11 = sand.u32 1, %s666_s12   ;;  %p980_p6 = scmp.ne.s32.totalorder %s971_s23, 0 }
 0x1ab   : > { %p981_p12 = scmp.ge.s32.totalorder %s686_s17, 2  ;;  %s311_s20 = scalar_lea.sflag [#allocation4], %s310_s11 }
 0x1ad   : > { %p450_p0 = pnand %p981_p12, %p980_p6 }
 0x1af   : > { %661 = dma.done.wait (!%p450_p0), %s311_s20, 256  }
 0x1b0   : > { %663 = vsyncadd (!%p450_p0), %s311_s20, 4294967040  ;;  %s20_s17 = sadd.s32 1, %s686_s17   ;;  %s982_s12 = smov %s670_s13 }
 0x1b1   : > { %p17_p5 = scmp.ge.s32.totalorder %s20_s17, 4   ;;  %s983_s13 = smov %s674_s14 }
 0x1b2   : > { %s984_s14 = smov %s848_s25  ;;  %s985_s15 = smov %s682_s16 }
 0x1b3   : > { %s986_s16 = smov %s988_s9  ;;  %19 = sbr.rel (!%p17_p5) target bundleno = 7 (0x7), region = 87 }
 0x1ba   :  { %316 = vsyncpa [#allocation3], 1 }
 0x1bb   :  { %318 = vsyncpa [#allocation3 + $0x1], 1 }
 0x1bc   :  { %319 = vsyncpa [#allocation6], 1 }
 0x1bd   :  { %320 = vsyncpa [#allocation4], 1 }
 0x1be   :  { %322 = vsyncpa [#allocation4 + $0x1], 1 }

</bundles_post_ra>
